<compile_context>
chip_gen: v6e
topology: v6e:2x2x1
jax: 0.10.0
libtpu: 0.0.40
codegen_flags: <defaults>
</compile_context>

<pallas_src>
import functools
import math
from functools import partial

import numpy as np

import jax
import jax.numpy as jnp
from jax.experimental import pallas as pl
from jax.experimental.pallas import tpu as pltpu

_MIB = 1024 * 1024
_TWO_PI = 2.0 * math.pi


def _round_up(x, m):
    return (x + m - 1) // m * m


def _wrap_pi(x):
    """Range-reduce to [-pi, pi) so the (EUP) sine stays accurate for large t."""
    return x - _TWO_PI * jnp.floor(x * (1.0 / _TWO_PI) + 0.5)


# ----------------------------------------------------------------------------
# Chip-dependent defaults + one-time capability probes (decided once, outside jit)
# ----------------------------------------------------------------------------
@functools.lru_cache(maxsize=None)
def _defaults():
    try:
        kind = jax.devices()[0].device_kind.lower()
    except Exception:
        kind = ""
    if "v5 lite" in kind or "v5lite" in kind or "v5e" in kind:
        # 128x128 MXU, no bf16 VPU/EUP -> 128-row tiles, f32 element-wise path.
        return dict(block_b=128, ew=jnp.float32, phys=128 * _MIB)
    if "v7" in kind:
        # 64 MiB VMEM per TensorCore, bf16 VPU/EUP, 256x256 MXU.
        return dict(block_b=256, ew=jnp.bfloat16, phys=64 * _MIB)
    if "v6" in kind:
        return dict(block_b=256, ew=jnp.bfloat16, phys=128 * _MIB)
    # Unknown / older chip: conservative defaults.
    return dict(block_b=128, ew=jnp.float32, phys=128 * _MIB)


@functools.lru_cache(maxsize=None)
def _inkernel_trig_supported():
    """One-time AOT compile probe: can Mosaic lower the in-kernel sinusoidal embedding?"""
    def k(t_ref, f_ref, o_ref):
        tb, dp = o_ref.shape
        a = (jnp.broadcast_to(t_ref[...], (tb, dp)) *
             jnp.broadcast_to(f_ref[...], (tb, dp)))
        o_ref[...] = jnp.sin(_wrap_pi(a))

    t = jax.ShapeDtypeStruct((8, 1), jnp.float32)
    f = jax.ShapeDtypeStruct((1, 128), jnp.float32)
    o = jax.ShapeDtypeStruct((8, 128), jnp.float32)
    try:
        jax.jit(pl.pallas_call(k, out_shape=o)).lower(t, f).compile()
        return True
    except Exception:
        return False


@functools.lru_cache(maxsize=None)
def _buffered_resident_supported():
    """One-time probe: does this jax/Mosaic accept pl.Buffered(1) on a constant-index spec?"""
    if not hasattr(pl, "Buffered"):
        return False

    def k(w_ref, x_ref, o_ref):
        o_ref[...] = x_ref[...] + w_ref[...]

    try:
        spec_w = pl.BlockSpec((8, 128), lambda i: (0, 0), pipeline_mode=pl.Buffered(1))
        spec_x = pl.BlockSpec((8, 128), lambda i: (i, 0))
        f = pl.pallas_call(
            k, out_shape=jax.ShapeDtypeStruct((16, 128), jnp.float32),
            grid=(2,), in_specs=[spec_w, spec_x], out_specs=spec_x)
        jax.jit(f).lower(jax.ShapeDtypeStruct((8, 128), jnp.float32),
                         jax.ShapeDtypeStruct((16, 128), jnp.float32)).compile()
        return True
    except Exception:
        return False


@functools.lru_cache(maxsize=None)
def _bf16_elementwise_supported():
    """One-time probe: bf16 SiLU / adds inside the kernel (v6e/v7x fast path)."""
    def k(x_ref, o_ref):
        v = x_ref[...]
        o_ref[...] = v * jax.nn.sigmoid(v) + v

    x = jax.ShapeDtypeStruct((16, 128), jnp.bfloat16)
    try:
        jax.jit(pl.pallas_call(k, out_shape=x)).lower(x).compile()
        return True
    except Exception:
        return False


def _resolve_elemwise_dtype(requested=None):
    ew = _defaults()["ew"] if requested is None else requested
    if np.dtype(ew) == np.dtype(jnp.bfloat16) and not _bf16_elementwise_supported():
        ew = jnp.float32
    return np.dtype(ew)


# ----------------------------------------------------------------------------
# Sinusoidal-embedding tables (parameter-free glue)
# ----------------------------------------------------------------------------
def _time_tables(dim, d_pad):
    """[1, d_pad] frequency + phase tables for a single-sin sinusoidal embedding.

    Lane j:   sin(t * f_j)                  0      <= j < dim//2
              cos(t * f_{j-dim//2})         dim//2 <= j < dim     (phase = pi/2)
              0                             dim    <= j < d_pad   (freq = phase = 0)

    TODO(synk): frequency denominator uses (half - 1) as in the original DDPM code;
    if the trained DDAE checkpoint's TimeEmbedding divides by `half`, change it here.
    """
    half = dim // 2
    freqs = jnp.exp(
        -math.log(10000.0) * jnp.arange(half, dtype=jnp.float32) / max(half - 1, 1))
    freq = (jnp.zeros((1, d_pad), jnp.float32)
            .at[0, :half].set(freqs).at[0, half:dim].set(freqs))
    phase = jnp.zeros((1, d_pad), jnp.float32).at[0, half:dim].set(math.pi / 2.0)
    return freq, phase


def _sin_embedding(t_col, freq, phase):
    """Glue-side sinusoidal embedding (fallback when in-kernel trig is unavailable)."""
    return jnp.sin(_wrap_pi(t_col * freq + phase))


# ----------------------------------------------------------------------------
# Kernel bodies
# ----------------------------------------------------------------------------
def _head(sin_emb, feats, wt1_ref, bt1_ref, wt2_ref, bt2_ref,
          w1_ref, b1_ref, w2_ref, b2_ref, out_ref, *, ew_dtype):
    """time-MLP (Linear->SiLU->Linear), feats + temb, head (Linear->SiLU->Linear)."""

    def dense(x, w_ref, b_ref):
        # Matmul operands in the (bf16) weight dtype, f32 MXU accumulation; the bias
        # add and everything element-wise downstream run in `ew_dtype`
        # (bf16 on v6e/v7x, f32 on v5e / unknown chips).
        y = jnp.dot(x.astype(w_ref.dtype), w_ref[...],
                    preferred_element_type=jnp.float32)
        return y.astype(ew_dtype) + b_ref[...].astype(ew_dtype)

    def silu(v):
        return v * jax.nn.sigmoid(v)

    temb = dense(silu(dense(sin_emb, wt1_ref, bt1_ref)), wt2_ref, bt2_ref)
    h = feats.astype(ew_dtype) + temb                       # x + time_emb(t)
    h = silu(dense(h, w1_ref, b1_ref))                      # Linear(d, 2d) -> SiLU
    logits = jnp.dot(h.astype(w2_ref.dtype), w2_ref[...],   # Linear(2d, C), f32 out
                     preferred_element_type=jnp.float32) + b2_ref[...]
    out_ref[...] = logits.astype(out_ref.dtype)


def _classifier_kernel_trig(t_ref, freq_ref, phase_ref, feats_ref,
                            wt1, bt1, wt2, bt2, w1, b1, w2, b2, out_ref, *, ew_dtype):
    """Sinusoidal time embedding built in-kernel: one range-reduced sin per lane."""
    tb, d_pad = feats_ref.shape
    args = (jnp.broadcast_to(t_ref[...], (tb, d_pad)) *        # lane broadcast of t
            jnp.broadcast_to(freq_ref[...], (tb, d_pad)) +     # sublane broadcast
            jnp.broadcast_to(phase_ref[...], (tb, d_pad)))     # pi/2 on the cos lanes
    sin_emb = jnp.sin(_wrap_pi(args))                          # padded lanes: sin(0)=0
    _head(sin_emb, feats_ref[...], wt1, bt1, wt2, bt2, w1, b1, w2, b2, out_ref,
          ew_dtype=ew_dtype)


def _classifier_kernel_precomp(emb_ref, feats_ref,
                               wt1, bt1, wt2, bt2, w1, b1, w2, b2, out_ref, *, ew_dtype):
    """Fallback: sinusoidal embedding precomputed in the (jitted) JAX glue."""
    _head(emb_ref[...], feats_ref[...], wt1, bt1, wt2, bt2, w1, b1, w2, b2, out_ref,
          ew_dtype=ew_dtype)


# ----------------------------------------------------------------------------
# Jitted fused forward (pad -> pallas_call -> slice)
# ----------------------------------------------------------------------------
@partial(jax.jit,
         static_argnames=("num_classes", "tb", "n_tiles", "feats_dtype", "ew_dtype",
                          "use_trig", "use_buffered", "vmem_limit"))
def _forward_impl(feats, t, params, *, num_classes, tb, n_tiles, feats_dtype,
                  ew_dtype, use_trig, use_buffered, vmem_limit):
    B, dim = feats.shape
    f_dt = np.dtype(feats_dtype)
    e_dt = np.dtype(ew_dtype)
    d_pad = params["wt1"].shape[0]
    h_pad = params["w1"].shape[1]
    c_pad = params["w2"].shape[1]
    b_pad = tb * n_tiles

    # ---- glue: cast feats to the streaming dtype; pad only when it is not a no-op.
    feats_c = feats.astype(f_dt)
    if (B, dim) != (b_pad, d_pad):
        feats_p = jnp.zeros((b_pad, d_pad), f_dt).at[:B, :dim].set(feats_c)
    else:
        feats_p = feats_c
    t_f = t.astype(jnp.float32)
    t_col = (t_f.reshape(B, 1) if B == b_pad
             else jnp.zeros((b_pad, 1), jnp.float32).at[:B, 0].set(t_f))

    freq, phase = _time_tables(dim, d_pad)

    def tiled(width):                       # batch-tiled operands / output
        return pl.BlockSpec((tb, width), lambda i: (i, 0))

    def resident(shape):                    # weights / tables: DMA once, stay resident
        if use_buffered:                    # constant-index block: a single buffer suffices
            return pl.BlockSpec(shape, lambda i: (0, 0), pipeline_mode=pl.Buffered(1))
        return pl.BlockSpec(shape, lambda i: (0, 0))

    wb = (params["wt1"], params["bt1"], params["wt2"], params["bt2"],
          params["w1"], params["b1"], params["w2"], params["b2"])
    wb_specs = [resident(a.shape) for a in wb]

    if use_trig:
        kernel = partial(_classifier_kernel_trig, ew_dtype=e_dt)
        lead_args = (t_col, freq, phase, feats_p)
        lead_specs = [tiled(1), resident((1, d_pad)), resident((1, d_pad)), tiled(d_pad)]
    else:
        emb = _sin_embedding(t_col, freq, phase)   # parameter-free, fused by XLA under jit
        kernel = partial(_classifier_kernel_precomp, ew_dtype=e_dt)
        lead_args = (emb, feats_p)
        lead_specs = [tiled(d_pad), tiled(d_pad)]

    weight_bytes = sum(int(a.size) * a.dtype.itemsize for a in wb) + 2 * d_pad * 4
    cost = pl.CostEstimate(
        flops=2 * b_pad * (2 * d_pad * d_pad + d_pad * h_pad + h_pad * c_pad),
        transcendentals=b_pad * (2 * d_pad + h_pad),          # sin + two SiLU sigmoids
        bytes_accessed=(b_pad * d_pad * f_dt.itemsize + b_pad * 4
                        + weight_bytes + b_pad * c_pad * 4))

    out = pl.pallas_call(
        kernel,
        out_shape=jax.ShapeDtypeStruct((b_pad, c_pad), jnp.float32),
        grid=(n_tiles,),
        in_specs=lead_specs + wb_specs,
        out_specs=tiled(c_pad),
        compiler_params=pltpu.CompilerParams(
            dimension_semantics=("parallel",),                # megacore: shard batch tiles
            vmem_limit_bytes=vmem_limit),
        cost_estimate=cost,
    )(*lead_args, *wb)

    # Padded logit lanes are exactly zero (zero-padded weights/biases, silu(0)=0);
    # slice them off so they can never win an argmax / pollute a softmax downstream.
    return out[:B, :num_classes]


# ----------------------------------------------------------------------------
# Public wrapper: resolves static config (chip defaults, probes, tile/VMEM budget)
# ----------------------------------------------------------------------------
def classifier_forward(feats, t, params, num_classes, *, block_b=None,
                       feats_dtype=jnp.bfloat16, elemwise_dtype=None,
                       use_inkernel_trig=None):
    """feats: [B, dim] (= feat_func(x, t)[blockname]); t: [B] diffusion timesteps."""
    B, dim = feats.shape
    d_pad = params["wt1"].shape[0]          # padded feature dim  (mult of 128)
    h_pad = params["w1"].shape[1]           # padded hidden dim   (mult of 128)
    c_pad = params["w2"].shape[1]           # padded num_classes  (mult of 128)

    cfg = _defaults()
    block_b = cfg["block_b"] if block_b is None else block_b
    e_dt = _resolve_elemwise_dtype(elemwise_dtype)
    f_dt = np.dtype(feats_dtype)
    use_trig = (_inkernel_trig_supported() if use_inkernel_trig is None
                else bool(use_inkernel_trig))
    use_buffered = _buffered_resident_supported()

    # ---- batch tile: at least 2 balanced tiles (megacore sharding + DMA/compute
    #      overlap), rows a multiple of 8, capped by block_b.
    n_tiles = max(pl.cdiv(B, block_b), 2)
    tb = min(_round_up(pl.cdiv(B, n_tiles), 8), _round_up(block_b, 8))

    # ---- VMEM budget: resident weights (+tables) + double-buffered streamed tiles
    #      + rough intermediate footprint; shrink the tile until it fits the cap.
    weight_bytes = (sum(int(v.size) * v.dtype.itemsize for v in params.values())
                    + 2 * d_pad * 4)
    weight_resident = weight_bytes * (1 if use_buffered else 2)

    def vmem_est(tb_):
        in_stream = tb_ * d_pad * f_dt.itemsize + tb_ * 4
        if not use_trig:
            in_stream += tb_ * d_pad * 4             # precomputed-embedding stream
        streams = 2 * (in_stream + tb_ * c_pad * 4)  # double-buffered in/out tiles
        interm = tb_ * (3 * d_pad + 2 * h_pad) * 4   # in-kernel temporaries (rough)
        return weight_resident + streams + interm

    cap = cfg["phys"] - 24 * _MIB                    # ~40 MiB cap on v7x, ~104 MiB else
    while tb > 8 and vmem_est(tb) + 8 * _MIB > cap:
        tb = max(8, _round_up(tb // 2, 8))
    n_tiles = pl.cdiv(B, tb)
    vmem_limit = int(min(cap, max(vmem_est(tb) + 8 * _MIB, 32 * _MIB)))

    return _forward_impl(
        feats, t, params,
        num_classes=int(num_classes), tb=int(tb), n_tiles=int(n_tiles),
        feats_dtype=f_dt, ew_dtype=e_dt,
        use_trig=bool(use_trig), use_buffered=bool(use_buffered),
        vmem_limit=vmem_limit)


# ----------------------------------------------------------------------------
# Parameter init (PyTorch nn.Linear-style uniform), 128-padded lanes + bf16 weights
# ----------------------------------------------------------------------------
def init_params(key, dim, num_classes, weight_dtype=jnp.bfloat16):
    """Weights stored [in_features, out_features] (row-major x @ W + b).

    Lane axes are zero-padded to multiples of 128 (lane-dense matmuls/stores); padded
    rows/cols are zero so padded lanes carry exact zeros end-to-end.  Weights are bf16
    (MXU-native, half the HBM/VMEM bytes); biases stay f32.
    """
    if dim % 2 != 0:
        raise ValueError("dim must be even for the sinusoidal time embedding")
    d_pad = _round_up(dim, 128)
    h_pad = _round_up(2 * dim, 128)
    c_pad = _round_up(num_classes, 128)

    def linear(k, fan_in, fan_out, in_pad, out_pad):
        kw, kb = jax.random.split(k)
        bound = 1.0 / math.sqrt(fan_in)
        w = jax.random.uniform(kw, (fan_in, fan_out), jnp.float32, -bound, bound)
        b = jax.random.uniform(kb, (1, fan_out), jnp.float32, -bound, bound)
        w_p = jnp.zeros((in_pad, out_pad), jnp.float32).at[:fan_in, :fan_out].set(w)
        b_p = jnp.zeros((1, out_pad), jnp.float32).at[:, :fan_out].set(b)
        return w_p.astype(weight_dtype), b_p

    k1, k2, k3, k4 = jax.random.split(key, 4)
    wt1, bt1 = linear(k1, dim, dim, d_pad, d_pad)             # TimeEmbedding lin 1
    wt2, bt2 = linear(k2, dim, dim, d_pad, d_pad)             # TimeEmbedding lin 2
    w1, b1 = linear(k3, dim, 2 * dim, d_pad, h_pad)           # cls Linear(d, 2d)
    w2, b2 = linear(k4, 2 * dim, num_classes, h_pad, c_pad)   # cls Linear(2d, C)
    return dict(wt1=wt1, bt1=bt1, wt2=wt2, bt2=bt2, w1=w1, b1=b1, w2=w2, b2=b2)


# ----------------------------------------------------------------------------
# Pure-JAX reference (mirrors the kernel's dtype choices)
# ----------------------------------------------------------------------------
def _reference(feats, t, params, num_classes, *,
               feats_dtype=jnp.bfloat16, elemwise_dtype=None):
    ew = _resolve_elemwise_dtype(elemwise_dtype)
    f_dt = np.dtype(feats_dtype)
    B, dim = feats.shape
    d_pad = params["wt1"].shape[0]

    freq, phase = _time_tables(dim, d_pad)
    t_col = t.astype(jnp.float32)[:, None]
    emb = _sin_embedding(t_col, freq, phase)
    feats_p = jnp.zeros((B, d_pad), f_dt).at[:, :dim].set(feats.astype(f_dt))

    def dense(x, w, b):
        y = jnp.dot(x.astype(w.dtype), w, preferred_element_type=jnp.float32)
        return y.astype(ew) + b.astype(ew)

    silu = lambda v: v * jax.nn.sigmoid(v)
    temb = dense(silu(dense(emb, params["wt1"], params["bt1"])),
                 params["wt2"], params["bt2"])
    h = silu(dense(feats_p.astype(ew) + temb, params["w1"], params["b1"]))
    logits = jnp.dot(h.astype(params["w2"].dtype), params["w2"],
                     preferred_element_type=jnp.float32) + params["b2"]
    return logits[:, :num_classes]


# ----------------------------------------------------------------------------
if __name__ == "__main__":
    # TODO(synk): feat_func (frozen diffusion UNet) is external; its pooled
    # `blockname` feature output is synthesized directly here.
    B, dim, num_classes = 16, 32, 10

    key = jax.random.PRNGKey(0)
    k_feat, k_t, k_param = jax.random.split(key, 3)

    feats = jax.random.normal(k_feat, (B, dim), jnp.float32)          # feat_func(x,t)[blockname]
    t = jax.random.randint(k_t, (B,), 0, 1000).astype(jnp.float32)    # diffusion timesteps
    params = init_params(k_param, dim, num_classes)

    # B=16 with the >=2-tile heuristic gives a (2,)-step grid, exercising the
    # batch-tiled pipeline even at this small test size.
    out = jax.block_until_ready(classifier_forward(feats, t, params, num_classes))
    ref = _reference(feats, t, params, num_classes)

    ew = _resolve_elemwise_dtype(None)
    tol = 2e-2 if ew == np.dtype(jnp.float32) else 5e-2   # bf16 element-wise path
    assert out.shape == (B, num_classes)
    assert jnp.allclose(out, ref, atol=tol, rtol=tol), "mismatch vs JAX reference"

    print("KERNEL_OK")
</pallas_src>

<mosaic_0001>
module attributes {stable_mosaic.version = 11 : i64} {
  func.func @_classifier_kernel_precomp(%arg0: i32, %arg1: memref<8x128xf32, #tpu.memory_space<vmem>>, %arg2: memref<8x128xbf16, #tpu.memory_space<vmem>>, %arg3: memref<128x128xbf16, #tpu.memory_space<vmem>>, %arg4: memref<1x128xf32, #tpu.memory_space<vmem>>, %arg5: memref<128x128xbf16, #tpu.memory_space<vmem>>, %arg6: memref<1x128xf32, #tpu.memory_space<vmem>>, %arg7: memref<128x128xbf16, #tpu.memory_space<vmem>>, %arg8: memref<1x128xf32, #tpu.memory_space<vmem>>, %arg9: memref<128x128xbf16, #tpu.memory_space<vmem>>, %arg10: memref<1x128xf32, #tpu.memory_space<vmem>>, %arg11: memref<8x128xf32, #tpu.memory_space<vmem>>) attributes {dimension_semantics = [#tpu.dimension_semantics<parallel>], iteration_bounds = array<i64: 2>, scalar_prefetch = 0 : i64, scratch_operands = 0 : i64, tpu.core_type = #tpu.core_type<tc>, window_params = [{transform_indices = @transform_0, window_bounds = array<i64: 8, 128>}, {transform_indices = @transform_1, window_bounds = array<i64: 8, 128>}, {pipeline_mode = #tpu.pipeline_mode<synchronous>, transform_indices = @transform_2, window_bounds = array<i64: 128, 128>}, {pipeline_mode = #tpu.pipeline_mode<synchronous>, transform_indices = @transform_3, window_bounds = array<i64: 1, 128>}, {pipeline_mode = #tpu.pipeline_mode<synchronous>, transform_indices = @transform_4, window_bounds = array<i64: 128, 128>}, {pipeline_mode = #tpu.pipeline_mode<synchronous>, transform_indices = @transform_5, window_bounds = array<i64: 1, 128>}, {pipeline_mode = #tpu.pipeline_mode<synchronous>, transform_indices = @transform_6, window_bounds = array<i64: 128, 128>}, {pipeline_mode = #tpu.pipeline_mode<synchronous>, transform_indices = @transform_7, window_bounds = array<i64: 1, 128>}, {pipeline_mode = #tpu.pipeline_mode<synchronous>, transform_indices = @transform_8, window_bounds = array<i64: 128, 128>}, {pipeline_mode = #tpu.pipeline_mode<synchronous>, transform_indices = @transform_9, window_bounds = array<i64: 1, 128>}, {transform_indices = @transform_10, window_bounds = array<i64: 8, 128>}]} {
    %c0 = arith.constant 0 : index
    %c0_0 = arith.constant 0 : index
    %0 = vector.load %arg1[%c0, %c0_0] : memref<8x128xf32, #tpu.memory_space<vmem>>, vector<8x128xf32>
    %c0_1 = arith.constant 0 : index
    %c0_2 = arith.constant 0 : index
    %1 = vector.load %arg2[%c0_1, %c0_2] : memref<8x128xbf16, #tpu.memory_space<vmem>>, vector<8x128xbf16>
    %2 = arith.truncf %0 : vector<8x128xf32> to vector<8x128xbf16>
    %c0_3 = arith.constant 0 : index
    %c0_4 = arith.constant 0 : index
    %3 = vector.load %arg3[%c0_3, %c0_4] : memref<128x128xbf16, #tpu.memory_space<vmem>>, vector<128x128xbf16>
    %cst = arith.constant dense<0.000000e+00> : vector<8x128xf32>
    %4 = tpu.matmul %2, %3, %cst {dimension_numbers = #tpu.dot_dimension_numbers<[1], [0], [0], [1], [0, 0, 1, 1], [], []>} : vector<8x128xbf16>, vector<128x128xbf16>, vector<8x128xf32> -> vector<8x128xf32>
    %c0_5 = arith.constant 0 : index
    %c0_6 = arith.constant 0 : index
    %5 = vector.load %arg4[%c0_5, %c0_6] : memref<1x128xf32, #tpu.memory_space<vmem>>, vector<1x128xf32>
    %6 = vector.broadcast %5 : vector<1x128xf32> to vector<8x128xf32>
    %7 = arith.addf %4, %6 : vector<8x128xf32>
    %8 = arith.negf %7 : vector<8x128xf32>
    %9 = math.exp %8 : vector<8x128xf32>
    %cst_7 = arith.constant 1.000000e+00 : f32
    %10 = vector.broadcast %cst_7 : f32 to vector<8x128xf32>
    %11 = arith.addf %10, %9 : vector<8x128xf32>
    %12 = arith.divf %10, %11 : vector<8x128xf32>
    %13 = arith.mulf %7, %12 : vector<8x128xf32>
    %14 = arith.truncf %13 : vector<8x128xf32> to vector<8x128xbf16>
    %c0_8 = arith.constant 0 : index
    %c0_9 = arith.constant 0 : index
    %15 = vector.load %arg5[%c0_8, %c0_9] : memref<128x128xbf16, #tpu.memory_space<vmem>>, vector<128x128xbf16>
    %cst_10 = arith.constant dense<0.000000e+00> : vector<8x128xf32>
    %16 = tpu.matmul %14, %15, %cst_10 {dimension_numbers = #tpu.dot_dimension_numbers<[1], [0], [0], [1], [0, 0, 1, 1], [], []>} : vector<8x128xbf16>, vector<128x128xbf16>, vector<8x128xf32> -> vector<8x128xf32>
    %c0_11 = arith.constant 0 : index
    %c0_12 = arith.constant 0 : index
    %17 = vector.load %arg6[%c0_11, %c0_12] : memref<1x128xf32, #tpu.memory_space<vmem>>, vector<1x128xf32>
    %18 = vector.broadcast %17 : vector<1x128xf32> to vector<8x128xf32>
    %19 = arith.addf %16, %18 : vector<8x128xf32>
    %20 = arith.extf %1 : vector<8x128xbf16> to vector<8x128xf32>
    %21 = arith.addf %20, %19 : vector<8x128xf32>
    %22 = arith.truncf %21 : vector<8x128xf32> to vector<8x128xbf16>
    %c0_13 = arith.constant 0 : index
    %c0_14 = arith.constant 0 : index
    %23 = vector.load %arg7[%c0_13, %c0_14] : memref<128x128xbf16, #tpu.memory_space<vmem>>, vector<128x128xbf16>
    %cst_15 = arith.constant dense<0.000000e+00> : vector<8x128xf32>
    %24 = tpu.matmul %22, %23, %cst_15 {dimension_numbers = #tpu.dot_dimension_numbers<[1], [0], [0], [1], [0, 0, 1, 1], [], []>} : vector<8x128xbf16>, vector<128x128xbf16>, vector<8x128xf32> -> vector<8x128xf32>
    %c0_16 = arith.constant 0 : index
    %c0_17 = arith.constant 0 : index
    %25 = vector.load %arg8[%c0_16, %c0_17] : memref<1x128xf32, #tpu.memory_space<vmem>>, vector<1x128xf32>
    %26 = vector.broadcast %25 : vector<1x128xf32> to vector<8x128xf32>
    %27 = arith.addf %24, %26 : vector<8x128xf32>
    %28 = arith.negf %27 : vector<8x128xf32>
    %29 = math.exp %28 : vector<8x128xf32>
    %cst_18 = arith.constant 1.000000e+00 : f32
    %30 = vector.broadcast %cst_18 : f32 to vector<8x128xf32>
    %31 = arith.addf %30, %29 : vector<8x128xf32>
    %32 = arith.divf %30, %31 : vector<8x128xf32>
    %33 = arith.mulf %27, %32 : vector<8x128xf32>
    %34 = arith.truncf %33 : vector<8x128xf32> to vector<8x128xbf16>
    %c0_19 = arith.constant 0 : index
    %c0_20 = arith.constant 0 : index
    %35 = vector.load %arg9[%c0_19, %c0_20] : memref<128x128xbf16, #tpu.memory_space<vmem>>, vector<128x128xbf16>
    %cst_21 = arith.constant dense<0.000000e+00> : vector<8x128xf32>
    %36 = tpu.matmul %34, %35, %cst_21 {dimension_numbers = #tpu.dot_dimension_numbers<[1], [0], [0], [1], [0, 0, 1, 1], [], []>} : vector<8x128xbf16>, vector<128x128xbf16>, vector<8x128xf32> -> vector<8x128xf32>
    %c0_22 = arith.constant 0 : index
    %c0_23 = arith.constant 0 : index
    %37 = vector.load %arg10[%c0_22, %c0_23] : memref<1x128xf32, #tpu.memory_space<vmem>>, vector<1x128xf32>
    %38 = vector.broadcast %37 : vector<1x128xf32> to vector<8x128xf32>
    %39 = arith.addf %36, %38 : vector<8x128xf32>
    %c0_24 = arith.constant 0 : index
    %c0_25 = arith.constant 0 : index
    %40 = vector.load %arg11[%c0_24, %c0_25] : memref<8x128xf32, #tpu.memory_space<vmem>>, vector<8x128xf32>
    tpu.vector_store %arg11[%c0_24, %c0_25], %39 {strides = array<i32>} : memref<8x128xf32, #tpu.memory_space<vmem>>, vector<8x128xf32>,
    return
  }
  func.func @transform_0(%arg0: i32) -> (i32, i32) {
    %c0_i32 = arith.constant 0 : i32
    %c0_i32_0 = arith.constant 0 : i32
    return %arg0, %c0_i32 : i32, i32
  }
  func.func @transform_1(%arg0: i32) -> (i32, i32) {
    %c0_i32 = arith.constant 0 : i32
    %c0_i32_0 = arith.constant 0 : i32
    return %arg0, %c0_i32 : i32, i32
  }
  func.func @transform_2(%arg0: i32) -> (i32, i32) {
    %c0_i32 = arith.constant 0 : i32
    %c0_i32_0 = arith.constant 0 : i32
    %c0_i32_1 = arith.constant 0 : i32
    return %c0_i32, %c0_i32_0 : i32, i32
  }
  func.func @transform_3(%arg0: i32) -> (i32, i32) {
    %c0_i32 = arith.constant 0 : i32
    %c0_i32_0 = arith.constant 0 : i32
    %c0_i32_1 = arith.constant 0 : i32
    return %c0_i32, %c0_i32_0 : i32, i32
  }
  func.func @transform_4(%arg0: i32) -> (i32, i32) {
    %c0_i32 = arith.constant 0 : i32
    %c0_i32_0 = arith.constant 0 : i32
    %c0_i32_1 = arith.constant 0 : i32
    return %c0_i32, %c0_i32_0 : i32, i32
  }
  func.func @transform_5(%arg0: i32) -> (i32, i32) {
    %c0_i32 = arith.constant 0 : i32
    %c0_i32_0 = arith.constant 0 : i32
    %c0_i32_1 = arith.constant 0 : i32
    return %c0_i32, %c0_i32_0 : i32, i32
  }
  func.func @transform_6(%arg0: i32) -> (i32, i32) {
    %c0_i32 = arith.constant 0 : i32
    %c0_i32_0 = arith.constant 0 : i32
    %c0_i32_1 = arith.constant 0 : i32
    return %c0_i32, %c0_i32_0 : i32, i32
  }
  func.func @transform_7(%arg0: i32) -> (i32, i32) {
    %c0_i32 = arith.constant 0 : i32
    %c0_i32_0 = arith.constant 0 : i32
    %c0_i32_1 = arith.constant 0 : i32
    return %c0_i32, %c0_i32_0 : i32, i32
  }
  func.func @transform_8(%arg0: i32) -> (i32, i32) {
    %c0_i32 = arith.constant 0 : i32
    %c0_i32_0 = arith.constant 0 : i32
    %c0_i32_1 = arith.constant 0 : i32
    return %c0_i32, %c0_i32_0 : i32, i32
  }
  func.func @transform_9(%arg0: i32) -> (i32, i32) {
    %c0_i32 = arith.constant 0 : i32
    %c0_i32_0 = arith.constant 0 : i32
    %c0_i32_1 = arith.constant 0 : i32
    return %c0_i32, %c0_i32_0 : i32, i32
  }
  func.func @transform_10(%arg0: i32) -> (i32, i32) {
    %c0_i32 = arith.constant 0 : i32
    %c0_i32_0 = arith.constant 0 : i32
    return %arg0, %c0_i32 : i32, i32
  }
}

</mosaic_0001>

<bundles_post_ra>
// kernel: _forward_impl.1
= control target key start
LH: loop header
LB: loop body
LE: loop exit
PB: predicated region body
PF: predicated region fallthrough
CT: control target
= control target key end

     0   :  { %15 = vsyncpa [#allocation3], 0  ;;  %s1727_s0 = inlined_call_operand.vmem [shape: f32[16,128], index: 0, kind: input, shape index: {}]   ;;  %s1728_s1 = inlined_call_operand.vmem [shape: bf16[16,128], index: 1, kind: input, shape index: {}]   ;;  %s1729_s2 = inlined_call_operand.vmem [shape: bf16[128,128], index: 2, kind: input, shape index: {}]   ;;  %s1730_s3 = inlined_call_operand.vmem [shape: f32[1,128], index: 3, kind: input, shape index: {}]   ;;  %s1731_s4 = inlined_call_operand.hbm [shape: bf16[128,128], index: 4, kind: input, shape index: {}]   ;;  %s1732_s5 = inlined_call_operand.vmem [shape: f32[1,128], index: 5, kind: input, shape index: {}]   ;;  %s1733_s6 = inlined_call_operand.hbm [shape: bf16[128,128], index: 6, kind: input, shape index: {}]   ;;  %s1734_s7 = inlined_call_operand.vmem [shape: f32[1,128], index: 7, kind: input, shape index: {}]   ;;  %s1735_s8 = inlined_call_operand.hbm [shape: bf16[128,128], index: 8, kind: input, shape index: {}]   ;;  %s1736_s9 = inlined_call_operand.vmem [shape: f32[1,128], index: 9, kind: input, shape index: {}]   ;;  %s1737_s10 = inlined_call_operand.hbm [shape: f32[16,128], index: 10, kind: output, shape index: {}]  }
   0x1   :  { %16 = vsyncpa [#allocation6], 0 }
   0x2   :  { %17 = vsyncpa [#allocation4], 0 }
   0x3   :  { %19 = vsyncpa [#allocation4 + $0x1], 0  ;;  %s1496_s13 = smov 0   ;;  %s1498_s14 = smov 0  }
   0x4   :  { %s1500_s15 = smov 0   ;;  %s1502_s16 = smov 0  }
   0x5 LB: > { %s1517_s17 = sadd.s32 4294967295, %s1431_s16   ;;  %s1000_s18 = sadd.s32 4294967294, %s1431_s16   ;;  %s1431_s16 = sphi %s1502_s16, %s1755_s16   ;;  %s1427_s15 = sphi %s1500_s15, %s1754_s15   ;;  %s1423_s14 = sphi %s1498_s14, %s1753_s14   ;;  %s1419_s13 = sphi %s1496_s13, %s1752_s13  }
   0x6   : > { %s1521_s19 = sadd.s32 1, %s1431_s16   ;;  %s252_s20 = sadd.s32 1, %s1427_s15 }
   0x7   : > { %s249_s21 = ssub.s32 %s1431_s16, %s1521_s19  ;;  %p262_p0 = scmp.ne.s32.totalorder %s1427_s15, %s1423_s14 }
   0x8   : > { %p250_p1 = scmp.eq.s32.totalorder %s249_s21, 0  ;;  %p263_p2 = scmp.eq.s32.totalorder %s1517_s17, 1 }
   0x9   : > { %p268_p3 = scmp.ne.s32.totalorder %s1423_s14, %s1419_s13  ;;  %p269_p4 = scmp.eq.s32.totalorder %s1000_s18, 1 }
   0xa   : > { %s1532_s22 = scalar_select %p250_p1, %s1427_s15, %s252_s20  }
   0xb   : > { %p1534_p5 = por %p263_p2, %p262_p0  ;;  %p1538_p6 = por %p269_p4, %p268_p3 }
   0xc   : > { %1740 = sst [smem:[#allocation12_spill]] %s1532_s22  ;;  %p1001_p7 = scmp.ge.s32.totalorder %s1431_s16, 1 }
   0xd   : > { %s1741_s23 = scalar_select %p1534_p5, 1, 0 }
   0xe   : > { %s1742_s24 = scalar_select %p1538_p6, 1, 0 }
   0xf   : > { %p276_p8 = scmp.lt.s32.totalorder %s1431_s16, 3  ;;  %p1738_p9 = scmp.eq.s32.totalorder %s1517_s17, 0 }
  0x10   : > { %s1433_s26 = smov [#allocation5]   ;;  %s1434_s29 = smov [#allocation2]  }
  0x11   : > { %p1545_p10 = pnand %p1001_p7, %p276_p8  ;;  %s310_s27 = sshll.u32 %s1433_s26, 4  ;;  %s311_s27 = int_to_ptr.vmem [resolvable:$true] %s310_s27 }
  0x12   : > { %s294_s30 = sshll.u32 %s1434_s29, 4  ;;  %s1435_s11 = smov [#allocation7]   ;;  %s295_s30 = int_to_ptr.vmem [resolvable:$true] %s294_s30 }
  0x13   : > { %p1185_p11 = pneg %p1545_p10  ;;  %s326_s12 = sshll.u32 %s1435_s11, 4  ;;  %s327_s12 = int_to_ptr.vmem [resolvable:$true] %s326_s12 }
  0x14   : > { %s1296_s18 = scalar_lea.vmem %s311_s27, 1024  ;;  %p1304_p3 = scmp.lt.s32.totalorder %s311_s27, %s311_s27 }
  0x15   : > { %p1553_p12 = pnand %p1738_p9, %p1185_p11  ;;  %p1297_p0 = scmp.ne.s32.totalorder %s311_s27, %s1296_s18 }
  0x16   : > { %p1305_p4 = scmp.lt.s32.totalorder %s1296_s18, %s1296_s18 }
  0x17   : > { %p1287_p13 = pneg %p1553_p12 }
  0x18   : > { %p1306_p7 = por %p1305_p4, %p1304_p3 }
  0x19   : > { %p1299_p1 = pnand %p1297_p0, %p1287_p13 }
  0x1b   : > { %p1300_p2 = pneg %p1299_p1 }
  0x1d   : > { %p1307_p8 = pnand %p1306_p7, %p1300_p2 }
  0x1f   : > { %1310 = shalt.err (!%p1307_p8)
}
  0x20   : > { %s1436_s20 = smov 64   ;;  %s1437_s21 = smov 4  }
  0x21   : > { %1191 = dma.hbm_to_vmem [thread:$0]  (!%p1553_p12), %s1733_s6, 1024, %s311_s27, [#allocation6], %s1436_s20, %s1436_s20, %s1437_s21  }
  0x22   : > { %s1322_s11 = scalar_lea.vmem %s295_s30, 1024  ;;  %p1330_p9 = scmp.lt.s32.totalorder %s295_s30, %s295_s30 }
  0x23   : > { %p1323_p11 = scmp.ne.s32.totalorder %s295_s30, %s1322_s11  ;;  %p1331_p6 = scmp.lt.s32.totalorder %s1322_s11, %s1322_s11 }
  0x25   : > { %p1325_p0 = pnand %p1323_p11, %p1287_p13  ;;  %p1332_p3 = por %p1331_p6, %p1330_p9 }
  0x27   : > { %p1326_p1 = pneg %p1325_p0 }
  0x29   : > { %p1333_p2 = pnand %p1332_p3, %p1326_p1 }
  0x2b   : > { %1336 = shalt.err (!%p1333_p2)
}
  0x2c   : > { %1188 = dma.hbm_to_vmem [thread:$0]  (!%p1553_p12), %s1731_s4, 1024, %s295_s30, [#allocation3], %s1436_s20, %s1436_s20, %s1437_s21  }
  0x2d   : > { %s1348_s27 = scalar_lea.vmem %s327_s12, 1024  ;;  %p1356_p11 = scmp.lt.s32.totalorder %s327_s12, %s327_s12 }
  0x2e   : > { %p1349_p4 = scmp.ne.s32.totalorder %s327_s12, %s1348_s27  ;;  %p1357_p0 = scmp.lt.s32.totalorder %s1348_s27, %s1348_s27 }
  0x30   : > { %p1351_p7 = pnand %p1349_p4, %p1287_p13  ;;  %p1358_p5 = por %p1357_p0, %p1356_p11 }
  0x32   : > { %p1352_p8 = pneg %p1351_p7 }
  0x34   : > { %p1359_p6 = pnand %p1358_p5, %p1352_p8 }
  0x36   : > { %1362 = shalt.err (!%p1359_p6)
}
  0x37   : > { %1194 = dma.hbm_to_vmem [thread:$0]  (!%p1553_p12), %s1735_s8, 1024, %s327_s12, [#allocation6], %s1436_s20, %s1436_s20, %s1437_s21  }
  0x38   : > { %359 = sbr.rel (%p1545_p10) target bundleno = 969 (0x3c9), region = 60  ;;  %p1745_p9 = scmp.eq.s32.totalorder (!%p1545_p10), %s1517_s17, 0 }
  0x3d   : > { %1406 = dma.done.wait (%p1745_p9), [#allocation3], 1024   ;;  %p1746_p13 = pmov %p1745_p9 }
  0x3e   : > { %p1747_p1 = pmov %p1745_p9 }
  0x3f   : > { %1408 = vsyncadd (%p1746_p13), [#allocation3], 4294966272 }
  0x40   : > { %1410 = dma.done.wait (%p1747_p1), [#allocation6], 2048   ;;  %p1748_p5 = pmov %p1747_p1 }
  0x41   : > { %v1438_v0 = vmov 0.0   ;;  %vm1439_vm0 = vmmov 0   ;;  %v1245_v1 = vld [vmem:[%s1729_s2 + $0x38] sm:$0xff]   ;;  %p408_p10 = scmp.lt.s32.totalorder %s1517_s17, 1  ;;  %v1246_v2 = vld [vmem:[%s1729_s2 + $0x30] sm:$0xff]   ;;  %v1247_v3 = vld [vmem:[%s1729_s2 + $0x28] sm:$0xff]  }
  0x42   : > { %1412 = vsyncadd (%p1748_p5), [#allocation6], 4294965248  ;;  %1091 = vmatprep.subr.bf16.mxu0 %v1438_v0  ;;  %1107 = vmatprep.mubr.msk.bf16.mxu0 %vm1439_vm0, %v1438_v0  ;;  %v1248_v4 = vld [vmem:[%s1729_s2 + $0x20] sm:$0xff]   ;;  %v1249_v5 = vld [vmem:[%s1729_s2 + $0x18] sm:$0xff]   ;;  %s405_s18 = sand.u32 1, %s1423_s14   ;;  %p1749_p3 = scmp.ne.s32.totalorder %s1741_s23, 0 }
  0x43   : > { %1111 = vmatprep.subr.bf16.mxu1 %v1438_v0  ;;  %1127 = vmatprep.mubr.msk.bf16.mxu1 %vm1439_vm0, %v1438_v0  ;;  %s1608_s12 = scalar_select %p408_p10, %s1517_s17, 1  ;;  %v1250_v6 = vld [vmem:[%s1729_s2 + $0x10] sm:$0xff]   ;;  %v1251_v7 = vld [vmem:[%s1729_s2 + $0x8] sm:$0xff]   ;;  %v1252_v8 = vld [vmem:[%s1729_s2] sm:$0xff]  }
  0x44   : > { %1092 = vmatpush3.bf16.msra.mxu0 %v1245_v1  ;;  %v1253_v11 = vld [vmem:[#allocation2 + $0x38] sm:$0xff]   ;;  %v1254_v12 = vld [vmem:[#allocation2 + $0x30] sm:$0xff]   ;;  %v1255_v13 = vld [vmem:[#allocation2 + $0x28] sm:$0xff]   ;;  %s1010_s26 = sshll.u32 %s405_s18, 3 }
  0x45   : > { %1093 = vmatprep.subr.bf16.mxu0 %v1438_v0  ;;  %s1011_s27 = sshll.u32 %s1608_s12, 3  ;;  %1112 = vmatpush3.bf16.msra.mxu1 %v1253_v11  ;;  %v1256_v14 = vld [vmem:[#allocation2 + $0x20] sm:$0xff]   ;;  %v1257_v15 = vld [vmem:[#allocation2 + $0x18] sm:$0xff]   ;;  %v1258_v16 = vld [vmem:[#allocation2 + $0x10] sm:$0xff]   ;;  %s1012_s22 = sshll.u32 %s1608_s12, 2 }
  0x46   : > { %s411_s11 = scalar_lea.vmem %s1727_s0, %s1011_s27  ;;  %1113 = vmatprep.subr.bf16.mxu1 %v1438_v0  ;;  %v1259_v17 = vld [vmem:[#allocation2 + $0x8] sm:$0xff]   ;;  %v1260_v18 = vld [vmem:[#allocation2] sm:$0xff]   ;;  %v1261_v19 = vld [vmem:[#allocation5 + $0x38] sm:$0xff]   ;;  %s415_s30 = scalar_lea.vmem %s1728_s1, %s1012_s22 }
  0x47   : > { %v417_v9 = vld [vmem:[%s411_s11] sm:$0xff]  ;;  %v1262_v20 = vld [vmem:[#allocation5 + $0x30] sm:$0xff]   ;;  %v1263_v21 = vld [vmem:[#allocation5 + $0x28] sm:$0xff]   ;;  %s1052_s22 = sshll.u32 %s1517_s17, 7  ;;  %s407_s25 = scalar_lea.vmem [#allocation8], %s1010_s26 }
  0x48   : > { %1094 = vmatpush3.bf16.msra.mxu0 %v1246_v2  ;;  %v419_v10 = vpack.c.bf16 %v417_v9, %v417_v9  ;;  %v1264_v22 = vld [vmem:[#allocation5 + $0x20] sm:$0xff]   ;;  %v1265_v23 = vld [vmem:[#allocation5 + $0x18] sm:$0xff]   ;;  %v1266_v24 = vld [vmem:[#allocation5 + $0x10] sm:$0xff]   ;;  %s898_s28 = sshll.u32 %s407_s25, 4  ;;  %s1686_s21 = scalar_lea.hbm %s1737_s10, %s1052_s22  ;;  %s1688_s28 = int_to_ptr.vmem [resolvable:$true] %s898_s28 }
  0x49   : > { %1095 = vmatprep.subr.bf16.mxu0 %v1438_v0  ;;  %1114 = vmatpush3.bf16.msra.mxu1 %v1254_v12  ;;  %v1013_v25 = vld [vmem:[%s1730_s3] ss:$0 sm:$0xff]  ;;  %v1267_v37 = vld [vmem:[#allocation5 + $0x8] sm:$0xff]   ;;  %v1269_v49 = vld [vmem:[#allocation7 + $0x38] sm:$0xff]   ;;  %s885_s12 = scalar_lea.sflag [#allocation4], %s405_s18  ;;  %s1363_s11 = scalar_lea.vmem %s1688_s28, 128 }
  0x4a   : > { %1115 = vmatprep.subr.bf16.mxu1 %v1438_v0  ;;  %v1268_v38 = vld [vmem:[#allocation5] sm:$0xff]   ;;  %v1270_v50 = vld [vmem:[#allocation7 + $0x30] sm:$0xff]   ;;  %v1271_v51 = vld [vmem:[#allocation7 + $0x28] sm:$0xff]   ;;  %p1364_p12 = scmp.ne.s32.totalorder %s1688_s28, %s1363_s11  ;;  %s1440_s17 = smov [#allocation8]  }
  0x4b   : > { %v418_v39 = vld [vmem:[%s415_s30] sm:$0xf]  ;;  %v1273_v53 = vld [vmem:[#allocation7 + $0x18] sm:$0xff]   ;;  %v1274_v54 = vld [vmem:[#allocation7 + $0x10] sm:$0xff]   ;;  %s1367_s26 = sshll.u32 %s1440_s17, 4  ;;  %s1368_s26 = int_to_ptr.vmem [resolvable:$false] %s1367_s26 }
  0x4c   : > { %1096 = vmatpush3.bf16.msra.mxu0 %v1247_v3  ;;  %v1023_v40 = vld [vmem:[%s1732_s5] ss:$0 sm:$0xff]  ;;  %v650_v41 = vunpack.c.l.bf16 %v418_v39  ;;  %v1275_v55 = vld [vmem:[#allocation7 + $0x8] sm:$0xff]   ;;  %p1365_p2 = pnand %p1364_p12, %p1749_p3  ;;  %s1369_s27 = scalar_lea.vmem %s1368_s26, 256 }
  0x4d   : > { %1097 = vmatprep.subr.bf16.mxu0 %v1438_v0  ;;  %1116 = vmatpush3.bf16.msra.mxu1 %v1255_v13  ;;  %v1272_v52 = vld [vmem:[#allocation7 + $0x20] sm:$0xff]   ;;  %p1370_p7 = scmp.lt.s32.totalorder %s1688_s28, %s1368_s26  ;;  %p1371_p8 = scmp.lt.s32.totalorder %s1369_s27, %s1363_s11 }
  0x4e   : > { %1117 = vmatprep.subr.bf16.mxu1 %v1438_v0  ;;  %v1276_v56 = vld [vmem:[#allocation7] sm:$0xff]   ;;  %p1366_p4 = pneg %p1365_p2 }
  0x4f   : > { %v1032_v57 = vld [vmem:[%s1734_s7] ss:$0 sm:$0xff]  ;;  %p1372_p11 = por %p1371_p8, %p1370_p7 }
  0x50   : > { %1098 = vmatpush3.bf16.msra.mxu0 %v1248_v4 }
  0x51   : > { %1099 = vmatprep.subr.bf16.mxu0 %v1438_v0  ;;  %1118 = vmatpush3.bf16.msra.mxu1 %v1256_v14  ;;  %p1373_p0 = pnand %p1372_p11, %p1366_p4 }
  0x52   : > { %1119 = vmatprep.subr.bf16.mxu1 %v1438_v0 }
  0x54   : > { %1100 = vmatpush3.bf16.msra.mxu0 %v1249_v5  ;;  %v1042_v5 = vld [vmem:[%s1736_s9] ss:$0 sm:$0xff] }
  0x55   : > { %1101 = vmatprep.subr.bf16.mxu0 %v1438_v0  ;;  %1120 = vmatpush3.bf16.msra.mxu1 %v1257_v15 }
  0x56   : > { %1121 = vmatprep.subr.bf16.mxu1 %v1438_v0 }
  0x58   : > { %1102 = vmatpush3.bf16.msra.mxu0 %v1250_v6 }
  0x59   : > { %1103 = vmatprep.subr.bf16.mxu0 %v1438_v0  ;;  %1122 = vmatpush3.bf16.msra.mxu1 %v1258_v16 }
  0x5a   : > { %1123 = vmatprep.subr.bf16.mxu1 %v1438_v0 }
  0x5c   : > { %1104 = vmatpush3.bf16.msra.mxu0 %v1251_v7 }
  0x5d   : > { %1105 = vmatprep.subr.bf16.mxu0 %v1438_v0  ;;  %1124 = vmatpush3.bf16.msra.mxu1 %v1259_v17 }
  0x5e   : > { %1125 = vmatprep.subr.bf16.mxu1 %v1438_v0 }
  0x60   : > { %1106 = vmatpush3.bf16.msra.mxu0 %v1252_v8 }
  0x61   : > { %1131 = vmatprep.subr.bf16.mxu0 %v1438_v0  ;;  %1126 = vmatpush3.bf16.msra.mxu1 %v1260_v18 }
  0x62   : > { %1151 = vmatprep.subr.bf16.mxu1 %v1438_v0 }
  0x63   : > { %1108 = vmatmul.mubr.bf16.vlgmr.msra.gmra.mxu0 %v419_v10 }
  0x64   : > { %1147 = vmatprep.mubr.msk.bf16.mxu0 %vm1439_vm0, %v1438_v0  ;;  %1132 = vmatpush3.bf16.msra.mxu0 %v1261_v19 }
  0x65   : > { %1133 = vmatprep.subr.bf16.mxu0 %v1438_v0 }
  0x68   : > { %1134 = vmatpush3.bf16.msra.mxu0 %v1262_v20 }
  0x69   : > { %1135 = vmatprep.subr.bf16.mxu0 %v1438_v0 }
  0x6c   : > { %1136 = vmatpush3.bf16.msra.mxu0 %v1263_v21 }
  0x6d   : > { %1137 = vmatprep.subr.bf16.mxu0 %v1438_v0 }
  0x70   : > { %1138 = vmatpush3.bf16.msra.mxu0 %v1264_v22 }
  0x71   : > { %1139 = vmatprep.subr.bf16.mxu0 %v1438_v0 }
  0x74   : > { %1140 = vmatpush3.bf16.msra.mxu0 %v1265_v23 }
  0x75   : > { %1141 = vmatprep.subr.bf16.mxu0 %v1438_v0 }
  0x78   : > { %1142 = vmatpush3.bf16.msra.mxu0 %v1266_v24 }
  0x79   : > { %1143 = vmatprep.subr.bf16.mxu0 %v1438_v0 }
  0x7c   : > { %1144 = vmatpush3.bf16.msra.mxu0 %v1267_v37 }
  0x7d   : > { %1145 = vmatprep.subr.bf16.mxu0 %v1438_v0 }
  0x80   : > { %1146 = vmatpush3.bf16.msra.mxu0 %v1268_v38 }
 0x123   : > { %v525_v26 = vpop.f32.mrf.mxu0 }
 0x124   : > { %v526_v27 = vadd.f32 %v1013_v25, %v525_v26 }
 0x125   : > { %v1109_v28 = vpop.f32.mrf.mxu0 }
 0x126   : > { %v1022_v29 = vmul.f32 -1.442695, %v526_v27 }
 0x127   : > { %v528_v30 = vpop.f32.mrf.mxu0 }
 0x128   : > { %1277 = vpow2.f32 %v1022_v29 }
 0x129   : > { %v1110_v31 = vpop.f32.mrf.mxu0 }
 0x135   : > { %v1278_v32 = vpop.eup %1277 }
 0x136   : > { %v534_v33 = vadd.f32 1.0, %v1278_v32 }
 0x138   : > { %1279 = vrcp.f32 %v534_v33 }
 0x145   : > { %v1280_v34 = vpop.eup %1279 }
 0x146   : > { %v537_v35 = vmul.f32 %v1280_v34, %v526_v27 }
 0x148   : > { %v538_v36 = vpack.c.bf16 %v537_v35, %v537_v35 }
 0x14a   : > { %1128 = vmatmul.mubr.bf16.vlgmr.msra.gmra.mxu1 %v538_v36 }
 0x14b   : > { %1167 = vmatprep.mubr.msk.bf16.mxu1 %vm1439_vm0, %v1438_v0  ;;  %1152 = vmatpush3.bf16.msra.mxu1 %v1269_v49 }
 0x14c   : > { %1153 = vmatprep.subr.bf16.mxu1 %v1438_v0 }
 0x14f   : > { %1154 = vmatpush3.bf16.msra.mxu1 %v1270_v50 }
 0x150   : > { %1155 = vmatprep.subr.bf16.mxu1 %v1438_v0 }
 0x153   : > { %1156 = vmatpush3.bf16.msra.mxu1 %v1271_v51 }
 0x154   : > { %1157 = vmatprep.subr.bf16.mxu1 %v1438_v0 }
 0x157   : > { %1158 = vmatpush3.bf16.msra.mxu1 %v1272_v52 }
 0x158   : > { %1159 = vmatprep.subr.bf16.mxu1 %v1438_v0 }
 0x15b   : > { %1160 = vmatpush3.bf16.msra.mxu1 %v1273_v53 }
 0x15c   : > { %1161 = vmatprep.subr.bf16.mxu1 %v1438_v0 }
 0x15f   : > { %1162 = vmatpush3.bf16.msra.mxu1 %v1274_v54 }
 0x160   : > { %1163 = vmatprep.subr.bf16.mxu1 %v1438_v0 }
 0x163   : > { %1164 = vmatpush3.bf16.msra.mxu1 %v1275_v55 }
 0x164   : > { %1165 = vmatprep.subr.bf16.mxu1 %v1438_v0 }
 0x167   : > { %1166 = vmatpush3.bf16.msra.mxu1 %v1276_v56 }
 0x20a   : > { %v644_v42 = vpop.f32.mrf.mxu1 }
 0x20b   : > { %v645_v43 = vadd.f32 %v1023_v40, %v644_v42 }
 0x20c   : > { %v1129_v44 = vpop.f32.mrf.mxu1 }
 0x20d   : > { %v651_v45 = vadd.f32 %v650_v41, %v645_v43 }
 0x20e   : > { %v647_v46 = vpop.f32.mrf.mxu1 }
 0x20f   : > { %v652_v47 = vpack.c.bf16 %v651_v45, %v651_v45 }
 0x210   : > { %v1130_v48 = vpop.f32.mrf.mxu1 }
 0x211   : > { %1148 = vmatmul.mubr.bf16.vlgmr.msra.gmra.mxu0 %v652_v47 }
 0x2d1   : > { %v758_v58 = vpop.f32.mrf.mxu0 }
 0x2d2   : > { %v759_v59 = vadd.f32 %v1032_v57, %v758_v58 }
 0x2d3   : > { %v1149_v60 = vpop.f32.mrf.mxu0 }
 0x2d4   : > { %v1041_v61 = vmul.f32 -1.442695, %v759_v59 }
 0x2d5   : > { %v761_v62 = vpop.f32.mrf.mxu0 }
 0x2d6   : > { %1281 = vpow2.f32 %v1041_v61 }
 0x2d7   : > { %v1150_v63 = vpop.f32.mrf.mxu0 }
 0x2e3   : > { %v1282_v1 = vpop.eup %1281 }
 0x2e4   : > { %v767_v2 = vadd.f32 1.0, %v1282_v1 }
 0x2e6   : > { %1283 = vrcp.f32 %v767_v2 }
 0x2f3   : > { %v1284_v3 = vpop.eup %1283 }
 0x2f4   : > { %v770_v0 = vmul.f32 %v1284_v3, %v759_v59 }
 0x2f6   : > { %v771_v4 = vpack.c.bf16 %v770_v0, %v770_v0 }
 0x2f8   : > { %1168 = vmatmul.mubr.bf16.vlgmr.msra.gmra.mxu1 %v771_v4 }
 0x3b8   : > { %v877_v6 = vpop.f32.mrf.mxu1 }
 0x3b9   : > { %v878_v7 = vadd.f32 %v1042_v5, %v877_v6 }
 0x3ba   : > { %v1169_v8 = vpop.f32.mrf.mxu1 }
 0x3bb   : > { %883 = vst [vmem:[%s407_s25] sm:$0xff] %v878_v7 }
 0x3bc   : > { %v880_v9 = vpop.f32.mrf.mxu1 }
 0x3bd   : > { %1376 = shalt.err (!%p1373_p0)
}
 0x3be   : > { %s1377_s29 = scalar_lea.hbm %s1686_s21, 128  ;;  %s1381_s25 = scalar_lea.hbm %s1737_s10, 256 }
 0x3bf   : > { %p1378_p6 = scmp.ne.s32.totalorder %s1686_s21, %s1377_s29  ;;  %p1382_p1 = scmp.lt.s32.totalorder %s1686_s21, %s1737_s10 }
 0x3c0   : > { %p1383_p5 = scmp.lt.s32.totalorder %s1381_s25, %s1377_s29 }
 0x3c1   : > { %p1379_p9 = pnand %p1378_p6, %p1749_p3 }
 0x3c2   : > { %p1384_p10 = por %p1383_p5, %p1382_p1 }
 0x3c3   : > { %p1380_p13 = pneg %p1379_p9 }
 0x3c5   : > { %p1385_p12 = pnand %p1384_p10, %p1380_p13 }
 0x3c7   : > { %1388 = shalt.err (!%p1385_p12)
}
 0x3c8   : > { %1183 = dma.vmem_to_hbm [thread:$0]  (%p1749_p3), %s1688_s28, 128, %s1686_s21, %s885_s12   ;;  %v1170_v10 = vpop.f32.mrf.mxu1 }
 0x3c9 PF: > { %p1205_p2 = scmp.ge.s32.totalorder %s1431_s16, 2  ;;  %s910_s11 = sand.u32 1, %s1419_s13  }
 0x3ca   : > { %p1750_p4 = scmp.ne.s32.totalorder %s1742_s24, 0  ;;  %s911_s17 = scalar_lea.sflag [#allocation4], %s910_s11 }
 0x3cc   : > { %p1196_p7 = pnand %p1205_p2, %p1750_p4 }
 0x3ce   : > { %p1197_p8 = pneg %p1196_p7 }
 0x3d0   : > { %1414 = dma.done.wait (%p1197_p8), %s911_s17, 128  }
 0x3d1   : > { %1416 = vsyncadd (%p1197_p8), %s911_s17, 4294967168  ;;  %s1751_s23 = sld [smem:[#allocation12_spill]]  ;;  %p22_p11 = scmp.ge.s32.totalorder %s1521_s19, 4  }
 0x3d2   : > { %s1752_s13 = smov %s1423_s14  ;;  %s1753_s14 = smov %s1427_s15 }
 0x3d3   : > { %s1755_s16 = smov %s1521_s19  ;;  %24 = sbr.rel (!%p22_p11) target bundleno = 5 (0x5), region = 111 }
 0x3d7   : > { %s1754_s15 = smov %s1751_s23 }
 0x3d8   :  { %916 = vsyncpa [#allocation3], 1 }
 0x3d9   :  { %918 = vsyncpa [#allocation3 + $0x1], 1 }
 0x3da   :  { %919 = vsyncpa [#allocation6], 1 }
 0x3db   :  { %920 = vsyncpa [#allocation4], 1 }
 0x3dc   :  { %922 = vsyncpa [#allocation4 + $0x1], 1 }

</bundles_post_ra>
